<compile_context>
chip_gen: v5e
topology: v5e:2x2
jax: 0.10.0
libtpu: 0.0.40
codegen_flags: <defaults>
</compile_context>

<pallas_src>
import functools

import jax
import jax.numpy as jnp
from jax import lax
from jax.experimental import pallas as pl
from jax.experimental.pallas import tpu as pltpu


def _label_smoothing_kernel(logits_ref, target_ref, out_ref, *,
                            smoothing, n_total, tile_rows):
    """One row tile: (TN, C) logits + (TN, 1) targets -> (1, 128) partial loss sum."""
    x = logits_ref[...].astype(jnp.float32)                 # (TN, C)
    tn, c = x.shape

    # Fused log-softmax statistics (no (TN, C) log_prob / weight materialized).
    m = jnp.max(x, axis=-1, keepdims=True)                  # (TN, 1)
    shifted = x - m                                         # (TN, C)
    lse = jnp.log(jnp.sum(jnp.exp(shifted), axis=-1, keepdims=True))   # (TN, 1)
    sum_shifted = jnp.sum(shifted, axis=-1, keepdims=True)             # (TN, 1)

    # shifted[i, target[i]] via compare + masked row reduce (TPU-friendly gather).
    tgt = target_ref[...]                                   # (TN, 1) int32
    col = lax.broadcasted_iota(jnp.int32, (tn, c), 1)
    shifted_tgt = jnp.sum(jnp.where(col == tgt, shifted, 0.0),
                          axis=-1, keepdims=True)           # (TN, 1)

    confidence = 1.0 - smoothing
    off_weight = smoothing / (c - 1.0)
    # loss_i = -[(1-s) * lp[i,t] + s/(C-1) * sum_{j != t} lp[i,j]],  lp = shifted - lse
    loss = (confidence * (lse - shifted_tgt)
            + off_weight * ((c - 1.0) * lse - sum_shifted + shifted_tgt))   # (TN, 1)

    # Mask rows of the (possibly partial) last tile so garbage rows contribute 0.
    row0 = pl.program_id(0) * tile_rows
    rows = row0 + lax.broadcasted_iota(jnp.int32, (tn, 1), 0)
    loss = jnp.where(rows < n_total, loss, 0.0)

    tile_sum = jnp.sum(loss)
    out_ref[...] = jnp.broadcast_to(tile_sum, (1, 128))     # lane-dense partial sum


def _choose_tile_rows(n, c, itemsize, *, vmem_budget_bytes=20 * 1024 * 1024):
    """Largest sublane-aligned row tile whose double-buffered block + f32 temps fit VMEM."""
    gran = max(8, 32 // itemsize)                 # 8 for f32, 16 for bf16, 32 for int8
    lane_c = ((c + 127) // 128) * 128             # lane-padded class width in VMEM
    per_row = 2 * lane_c * itemsize + 3 * lane_c * 4   # 2x HBM-dtype buffers + f32 temps
    tn = (vmem_budget_bytes // per_row) // gran * gran
    tn = int(max(gran, min(tn, 1024)))
    padded_n = ((n + gran - 1) // gran) * gran
    return int(min(tn, max(padded_n, gran)))


def label_smoothing_loss_v3(logits, target, *, smoothing=0.0, tile_rows=None):
    """logits: (..., C) float32/bfloat16; target: (...,) int. Returns scalar f32 loss."""
    *lead, c = logits.shape
    n = 1
    for d in lead:
        n *= d
    x = logits.reshape(n, c)
    tgt = target.reshape(n, 1).astype(jnp.int32)

    if tile_rows is None:
        tile_rows = _choose_tile_rows(n, c, x.dtype.itemsize)
    num_tiles = -(-n // tile_rows)                # cdiv

    kernel = functools.partial(
        _label_smoothing_kernel,
        smoothing=float(smoothing),
        n_total=int(n),
        tile_rows=int(tile_rows),
    )

    partials = pl.pallas_call(
        kernel,
        out_shape=jax.ShapeDtypeStruct((1, num_tiles * 128), jnp.float32),
        grid=(num_tiles,),
        in_specs=[
            pl.BlockSpec((tile_rows, c), lambda i: (i, 0)),   # logits row tile
            pl.BlockSpec((tile_rows, 1), lambda i: (i, 0)),   # targets row tile
        ],
        out_specs=pl.BlockSpec((1, 128), lambda i: (0, i)),   # per-tile partial sum
        compiler_params=pltpu.CompilerParams(
            dimension_semantics=("parallel",),                # shards tiles across TCs (v7x)
            vmem_limit_bytes=32 * 1024 * 1024,
        ),
    )(x, tgt)

    tile_sums = partials.reshape(num_tiles, 128)[:, 0]        # every lane holds the same value
    return jnp.sum(tile_sums) / jnp.float32(n)                # mean over all rows


def _reference(logits, target, smoothing):
    """Pure-JAX transcription of the PyTorch module."""
    x = logits.astype(jnp.float32)
    c = x.shape[-1]
    log_prob = jax.nn.log_softmax(x, axis=-1)
    w = jnp.full(x.shape, smoothing / (c - 1.0), dtype=jnp.float32)
    onehot = jax.nn.one_hot(target, c, dtype=jnp.bool_)
    w = jnp.where(onehot, 1.0 - smoothing, w)
    return (-w * log_prob).sum(axis=-1).mean()


if __name__ == "__main__":
    key = jax.random.PRNGKey(0)
    k1, k2 = jax.random.split(key)

    B, S, C = 4, 5, 160          # N = 20 rows -> 3 tiles with tile_rows=8 (partial last tile)
    logits = jax.random.normal(k1, (B, S, C), dtype=jnp.float32)
    target = jax.random.randint(k2, (B, S), 0, C, dtype=jnp.int32)

    out = label_smoothing_loss_v3(logits, target, smoothing=0.1, tile_rows=8)
    out = jax.block_until_ready(out)
    ref = _reference(logits, target, 0.1)
    assert jnp.allclose(out, ref, atol=1e-5, rtol=1e-5), (out, ref)

    # bf16-in-HBM path (cast to f32 per tile inside the kernel).
    logits_bf16 = logits.astype(jnp.bfloat16)
    out_bf = jax.block_until_ready(
        label_smoothing_loss_v3(logits_bf16, target, smoothing=0.1, tile_rows=16))
    ref_bf = _reference(logits_bf16, target, 0.1)
    assert jnp.allclose(out_bf, ref_bf, atol=1e-3, rtol=1e-3), (out_bf, ref_bf)

    print("KERNEL_OK")
</pallas_src>

<mosaic_0001>
module attributes {stable_mosaic.version = 11 : i64} {
  func.func @_label_smoothing_kernel(%arg0: i32, %arg1: memref<8x160xf32, #tpu.memory_space<vmem>>, %arg2: memref<8x1xi32, #tpu.memory_space<vmem>>, %arg3: memref<1x128xf32, #tpu.memory_space<vmem>>) attributes {dimension_semantics = [#tpu.dimension_semantics<parallel>], iteration_bounds = array<i64: 3>, scalar_prefetch = 0 : i64, scratch_operands = 0 : i64, tpu.core_type = #tpu.core_type<tc>, window_params = [{transform_indices = @transform_0, window_bounds = array<i64: 8, 160>}, {transform_indices = @transform_1, window_bounds = array<i64: 8, 1>}, {transform_indices = @transform_2, window_bounds = array<i64: 1, 128>}]} {
    %c0 = arith.constant 0 : index
    %c0_0 = arith.constant 0 : index
    %0 = vector.load %arg1[%c0, %c0_0] : memref<8x160xf32, #tpu.memory_space<vmem>>, vector<8x160xf32>
    %cst = arith.constant dense<0xFF800000> : vector<8xf32>
    %1 = vector.multi_reduction <maximumf>, %0, %cst [1] : vector<8x160xf32> to vector<8xf32>
    %2 = vector.shape_cast %1 : vector<8xf32> to vector<8x1xf32>
    %3 = vector.broadcast %2 : vector<8x1xf32> to vector<8x160xf32>
    %4 = arith.subf %0, %3 : vector<8x160xf32>
    %5 = math.exp %4 : vector<8x160xf32>
    %cst_1 = arith.constant dense<0.000000e+00> : vector<8xf32>
    %6 = vector.multi_reduction <add>, %5, %cst_1 [1] : vector<8x160xf32> to vector<8xf32>
    %7 = vector.shape_cast %6 : vector<8xf32> to vector<8x1xf32>
    %8 = math.log %7 : vector<8x1xf32>
    %cst_2 = arith.constant dense<0.000000e+00> : vector<8xf32>
    %9 = vector.multi_reduction <add>, %4, %cst_2 [1] : vector<8x160xf32> to vector<8xf32>
    %10 = vector.shape_cast %9 : vector<8xf32> to vector<8x1xf32>
    %c0_3 = arith.constant 0 : index
    %c0_4 = arith.constant 0 : index
    %11 = vector.load %arg2[%c0_3, %c0_4] : memref<8x1xi32, #tpu.memory_space<vmem>>, vector<8x1xi32>
    %12 = tpu.iota {dimensions = array<i32: 1>} : vector<8x160xi32>
    %13 = vector.broadcast %11 : vector<8x1xi32> to vector<8x160xi32>
    %14 = arith.cmpi eq, %12, %13 : vector<8x160xi32>
    %cst_5 = arith.constant 0.000000e+00 : f32
    %15 = vector.broadcast %cst_5 : f32 to vector<8x160xf32>
    %16 = arith.select %14, %4, %15 : vector<8x160xi1>, vector<8x160xf32>
    %cst_6 = arith.constant dense<0.000000e+00> : vector<8xf32>
    %17 = vector.multi_reduction <add>, %16, %cst_6 [1] : vector<8x160xf32> to vector<8xf32>
    %18 = vector.shape_cast %17 : vector<8xf32> to vector<8x1xf32>
    %19 = arith.subf %8, %18 : vector<8x1xf32>
    %cst_7 = arith.constant 0.899999976 : f32
    %20 = vector.broadcast %cst_7 : f32 to vector<8x1xf32>
    %21 = arith.mulf %20, %19 : vector<8x1xf32>
    %cst_8 = arith.constant 1.590000e+02 : f32
    %22 = vector.broadcast %cst_8 : f32 to vector<8x1xf32>
    %23 = arith.mulf %22, %8 : vector<8x1xf32>
    %24 = arith.subf %23, %10 : vector<8x1xf32>
    %25 = arith.addf %24, %18 : vector<8x1xf32>
    %cst_9 = arith.constant 6.28930808E-4 : f32
    %26 = vector.broadcast %cst_9 : f32 to vector<8x1xf32>
    %27 = arith.mulf %26, %25 : vector<8x1xf32>
    %28 = arith.addf %21, %27 : vector<8x1xf32>
    %c8_i32 = arith.constant 8 : i32
    %29 = arith.muli %arg0, %c8_i32 : i32
    %30 = tpu.iota {dimensions = array<i32: 0>} : vector<8x1xi32>
    %31 = vector.broadcast %29 : i32 to vector<8x1xi32>
    %32 = arith.addi %31, %30 : vector<8x1xi32>
    %c20_i32 = arith.constant 20 : i32
    %33 = vector.broadcast %c20_i32 : i32 to vector<8x1xi32>
    %34 = arith.cmpi slt, %32, %33 : vector<8x1xi32>
    %cst_10 = arith.constant 0.000000e+00 : f32
    %35 = vector.broadcast %cst_10 : f32 to vector<8x1xf32>
    %36 = arith.select %34, %28, %35 : vector<8x1xi1>, vector<8x1xf32>
    %37 = vector.shape_cast %36 : vector<8x1xf32> to vector<1x8x1xf32>
    %cst_11 = arith.constant dense<0.000000e+00> : vector<1xf32>
    %38 = vector.multi_reduction <add>, %37, %cst_11 [1, 2] : vector<1x8x1xf32> to vector<1xf32>
    %39 = vector.shape_cast %38 : vector<1xf32> to vector<1x1x1xf32>
    %40 = vector.extract %39[0, 0, 0] : f32 from vector<1x1x1xf32>
    %41 = vector.broadcast %40 : f32 to vector<1x128xf32>
    %c0_12 = arith.constant 0 : index
    %c0_13 = arith.constant 0 : index
    %42 = vector.load %arg3[%c0_12, %c0_13] : memref<1x128xf32, #tpu.memory_space<vmem>>, vector<1x128xf32>
    tpu.vector_store %arg3[%c0_12, %c0_13], %41 {strides = array<i32>} : memref<1x128xf32, #tpu.memory_space<vmem>>, vector<1x128xf32>,
    return
  }
  func.func @transform_0(%arg0: i32) -> (i32, i32) {
    %c0_i32 = arith.constant 0 : i32
    %c0_i32_0 = arith.constant 0 : i32
    return %arg0, %c0_i32 : i32, i32
  }
  func.func @transform_1(%arg0: i32) -> (i32, i32) {
    %c0_i32 = arith.constant 0 : i32
    %c0_i32_0 = arith.constant 0 : i32
    return %arg0, %c0_i32 : i32, i32
  }
  func.func @transform_2(%arg0: i32) -> (i32, i32) {
    %c0_i32 = arith.constant 0 : i32
    %c0_i32_0 = arith.constant 0 : i32
    return %c0_i32, %arg0 : i32, i32
  }
}

</mosaic_0001>

<bundles_post_ra>
// kernel: tpu_custom_call.1
= control target key start
LH: loop header
LB: loop body
LE: loop exit
PB: predicated region body
PF: predicated region fallthrough
CT: control target
= control target key end

     0   :  { %7 = vsyncpa [#allocation3], 0  ;;  %s653_s0 = inlined_call_operand.hbm [shape: f32[20,160], index: 0, kind: input, shape index: {}]   ;;  %s654_s1 = inlined_call_operand.vmem [shape: s32[20,1], index: 1, kind: input, shape index: {}]   ;;  %s655_s2 = inlined_call_operand.hbm [shape: f32[1,384], index: 2, kind: output, shape index: {}]  }
   0x1   :  { %9 = vsyncpa [#allocation3 + $0x1], 0 }
   0x2   :  { %10 = vsyncpa [#allocation4], 0 }
   0x3   :  { %12 = vsyncpa [#allocation4 + $0x1], 0  ;;  %s517_s9 = smov 0   ;;  %s519_s10 = smov 0  }
   0x4   :  { %s521_s11 = smov 0   ;;  %s523_s12 = smov 0  }
   0x5 LB: > { %s538_s13 = sadd.s32 4294967295, %s499_s12   ;;  %s334_s14 = sadd.s32 4294967294, %s499_s12   ;;  %s499_s12 = sphi %s523_s12, %s664_s12   ;;  %s495_s11 = sphi %s521_s11, %s663_s11   ;;  %s491_s10 = sphi %s519_s10, %s662_s10   ;;  %s487_s9 = sphi %s517_s9, %s661_s9  }
   0x6   : > { %s542_s15 = sadd.s32 1, %s499_s12   ;;  %s25_s16 = sadd.s32 1, %s495_s11 }
   0x7   : > { %s22_s17 = ssub.s32 %s499_s12, %s542_s15  ;;  %p32_p0 = scmp.ne.s32.totalorder %s495_s11, %s491_s10 }
   0x8   : > { %p23_p1 = scmp.eq.s32.totalorder %s22_s17, 0  ;;  %p33_p2 = scmp.eq.s32.totalorder %s499_s12, 0 }
   0x9   : > { %p38_p3 = scmp.ne.s32.totalorder %s491_s10, %s487_s9  ;;  %p39_p4 = scmp.eq.s32.totalorder %s538_s13, 0 }
   0xa   : > { %s554_s18 = scalar_select %p23_p1, %s495_s11, %s25_s16  }
   0xb   : > { %p556_p5 = por %p33_p2, %p32_p0  ;;  %p560_p6 = por %p39_p4, %p38_p3 }
   0xc   : > { %p88_p7 = scmp.eq.s32.totalorder %s538_s13, 2  ;;  %p94_p8 = scmp.eq.s32.totalorder %s334_s14, 2 }
   0xd   : > { %p361_p9 = scmp.lt.s32.totalorder %s499_s12, 3  ;;  %s114_s23 = sand.u32 1, %s495_s11  }
   0xe   : > { %p566_p10 = por %p88_p7, %p32_p0  ;;  %p570_p11 = por %p94_p8, %p38_p3 }
   0xf   : > { %s346_s24 = sshll.u32 %s499_s12, 4  ;;  %s337_s25 = sshll.u32 %s114_s23, 4 }
  0x10   : > { %s123_s28 = scalar_lea.hbm %s653_s0, %s346_s24  ;;  %s118_s30 = scalar_lea.vmem [#allocation2], %s337_s25 }
  0x11   : > { %s125_s29 = sshll.u32 %s123_s28, 4  ;;  %s127_s3 = sshll.u32 %s118_s30, 4  ;;  %s126_s29 = int_to_ptr.hbm [resolvable:$true] %s125_s29  ;;  %s128_s3 = int_to_ptr.vmem [resolvable:$true] %s127_s3 }
  0x12   : > { %p581_p12 = pnand %p361_p9, %p556_p5  ;;  %p340_p13 = scmp.ge.s32.totalorder %s499_s12, 1 }
  0x13   : > { %p139_p0 = scmp.lt.s32.totalorder %s499_s12, 4  ;;  %s115_s5 = scalar_lea.sflag [#allocation3], %s114_s23 }
  0x14   : > { %s403_s6 = sshra.s32 %s126_s29, 4  ;;  %p407_p2 = pneg %p581_p12  ;;  %s404_s6 = int_to_ptr.hbm [resolvable:$true] %s403_s6 }
  0x15   : > { %s405_s7 = scalar_lea.hbm %s404_s6, 16  ;;  %s410_s16 = scalar_lea.hbm %s653_s0, 48 }
  0x16   : > { %p406_p1 = scmp.ne.s32.totalorder %s404_s6, %s405_s7  ;;  %p411_p5 = scmp.lt.s32.totalorder %s404_s6, %s653_s0 }
  0x17   : > { %p412_p7 = scmp.lt.s32.totalorder %s410_s16, %s405_s7 }
  0x18   : > { %p408_p3 = pnand %p407_p2, %p406_p1 }
  0x19   : > { %p413_p8 = por %p412_p7, %p411_p5 }
  0x1a   : > { %p409_p4 = pneg %p408_p3 }
  0x1c   : > { %p414_p9 = pnand %p413_p8, %p409_p4 }
  0x1e   : > { %417 = shalt.err (!%p414_p9)
}
  0x1f   : > { %356 = dma.hbm_to_vmem [thread:$0]  (!%p581_p12), %s126_s29, 256, %s128_s3, %s115_s5  }
  0x20   : > { %p140_p1 = pnand %p340_p13, %p139_p0 }
  0x21   : > { %s602_s23 = sand.u32 (!%p140_p1), 1, %s491_s10  }
  0x22   : > { %143 = sbr.rel (%p140_p1) target bundleno = 494 (0x1ee), region = 28  ;;  %s341_s24 = sshll.u32 (!%p140_p1), %s602_s23, 4 }
  0x23   : > { %s146_s25 = scalar_lea.sflag (!%p140_p1), [#allocation3], %s602_s23  ;;  %s149_s26 = scalar_lea.vmem (!%p140_p1), [#allocation2], %s341_s24 }
  0x27   : > { %478 = dma.done.wait (%p560_p6), %s146_s25, 256  }
  0x28   : > { %480 = vsyncadd (%p560_p6), %s146_s25, 4294967040  ;;  %v501_v0 = vmov 0   ;;  %vm180_vm0 = vcmask 261120   ;;  %v178_v1 = vld [vmem:[%s149_s26] sm:$0xff]  ;;  %v179_v2 = vld [vmem:[%s149_s26 + $0x8] sm:$0xff]  ;;  %p174_p12 = scmp.lt.s32.totalorder %s538_s13, 2  ;;  %v202_v11 = vlaneseq  ;;  %s252_s6 = scalar_lea.hbm %s655_s2, %s538_s13 }
  0x29   : > { %396 = vset.pattern.permute.xlu0 %v501_v0  ;;  %v181_v3 = vsel %vm180_vm0, %v179_v2, -inf  ;;  %s343_s20 = sshll.u32 %s538_s13, 3  ;;  %vm230_vm4 = vcmask 7168   ;;  %s173_s7 = scalar_lea.vmem [#allocation5], %s602_s23 }
  0x2a   : > { %v182_v4 = vmax.f32 %v178_v1, %v181_v3  ;;  %s175_s27 = scalar_select %p174_p12, %s538_s13, 2  ;;  %v203_v14 = vand.u32 127, %v202_v11  ;;  %v225_v29 = vshrl.u32 %v202_v11, 7  ;;  %v226_v31 = vstv %s343_s20 }
  0x2b   : > { %s254_s8 = sshll.u32 %s173_s7, 4  ;;  %s256_s14 = sshll.u32 %s252_s6, 4  ;;  %s255_s8 = int_to_ptr.vmem [resolvable:$true] %s254_s8  ;;  %s257_s14 = int_to_ptr.hbm [resolvable:$true] %s256_s14 }
  0x2c   : > { %183 = vmax.xlane.f32.xlu0 %v182_v4  ;;  %s342_s28 = sshll.u32 %s175_s27, 3  ;;  %v204_v17 = vadd.s32 128, %v203_v14  ;;  %v227_v35 = vadd.s32 %v226_v31, %v225_v29  ;;  %s244_s17 = scalar_lea.sflag [#allocation4], %s602_s23 }
  0x2d   : > { %s177_s3 = scalar_lea.vmem %s654_s1, %s342_s28  ;;  %s447_s19 = sshra.s32 %s257_s14, 4  ;;  %s448_s19 = int_to_ptr.hbm [resolvable:$true] %s447_s19 }
  0x2e   : > { %v201_v5 = vld [vmem:[%s177_s3] sm:$0xff]  ;;  %vm228_vm3 = vcmp.lt.s32.totalorder %v227_v35, 20  ;;  %s449_s24 = scalar_lea.hbm %s448_s19, 1  ;;  %s453_s13 = scalar_lea.hbm %s655_s2, 3 }
  0x2f   : > { %p450_p6 = scmp.ne.s32.totalorder %s448_s19, %s449_s24  ;;  %p454_p2 = scmp.lt.s32.totalorder %s448_s19, %s655_s2 }
  0x30   : > { %p455_p3 = scmp.lt.s32.totalorder %s453_s13, %s449_s24 }
  0x31   : > { %p451_p13 = pnand %p450_p6, %p566_p10 }
  0x32   : > { %p456_p4 = por %p455_p3, %p454_p2 }
  0x33   : > { %p452_p0 = pneg %p451_p13 }
  0x35   : > { %p457_p5 = pnand %p456_p4, %p452_p0 }
  0x40   : > { %206 = vperm.xlu0 %396, %v201_v5  }
  0x9f   : > { %v184_v6 = vpop.xlane.xlu0 %183 }
  0xa0   : > { %v185_v7 = vsub.f32 %v178_v1, %v184_v6  ;;  %v186_v8 = vsub.f32 %v179_v2, %v184_v6 }
  0xa2   : > { %v187_v9 = vmul.f32 1.442695, %v185_v7  ;;  %v189_v10 = vmul.f32 1.442695, %v186_v8  ;;  %v197_v19 = vsel %vm180_vm0, %v186_v8, 0.0 }
  0xa3   : > { %v198_v22 = vadd.f32 %v197_v19, %v185_v7 }
  0xa4   : > { %397 = vpow2.f32 %v187_v9 }
  0xa5   : > { %399 = vpow2.f32 %v189_v10 }
  0xaa   : > { %v398_v12 = vpop.eup %397 }
  0xab   : > { %v400_v13 = vpop.eup %399 }
  0xac   : > { %v191_v15 = vsel %vm180_vm0, %v400_v13, 0.0 }
  0xad   : > { %v192_v16 = vadd.f32 %v398_v12, %v191_v15 }
  0xaf   : > { %193 = vadd.xlane.f32.xlu1 %v192_v16 }
  0xb2   : > { %v207_v18 = vpop.permute.xlu0 %206 }
  0xb3   : > { %vm208_vm1 = vcmp.eq.s32.totalorder %v203_v14, %v207_v18  ;;  %vm209_vm2 = vcmp.eq.s32.totalorder %v204_v17, %v207_v18 }
  0xb4   : > { %v211_v20 = vsel %vm209_vm2, %v186_v8, 0.0  ;;  %v210_v21 = vsel %vm208_vm1, %v185_v7, 0.0 }
  0xb5   : > { %v212_v23 = vsel %vm180_vm0, %v211_v20, 0.0 }
  0xb6   : > { %v213_v24 = vadd.f32 %v212_v23, %v210_v21 }
  0xb7   : > { %199 = vadd.xlane.f32.xlu1 %v198_v22 }
  0xb8   : > { %214 = vadd.xlane.f32.xlu2 %v213_v24 }
 0x122   : > { %v194_v25 = vpop.xlane.xlu1 %193 }
 0x123   : > { %401 = vlog2.f32 %v194_v25 }
 0x129   : > { %v402_v26 = vpop.eup %401 }
 0x12a   : > { %v196_v27 = vmul.f32 0.6931472, %v402_v26  ;;  %v200_v32 = vpop.xlane.xlu1 %199 }
 0x12b   : > { %v215_v28 = vpop.xlane.xlu2 %214 }
 0x12c   : > { %v218_v30 = vmul.f32 159.0, %v196_v27  ;;  %v216_v34 = vsub.f32 %v196_v27, %v215_v28 }
 0x12e   : > { %v219_v33 = vsub.f32 %v218_v30, %v200_v32  ;;  %v217_v37 = vmul.f32 0.9, %v216_v34 }
 0x130   : > { %v220_v36 = vadd.f32 %v219_v33, %v215_v28 }
 0x132   : > { %v221_v38 = vmul.f32 0.0006289308, %v220_v36 }
 0x134   : > { %v222_v39 = vadd.f32 %v221_v38, %v217_v37 }
 0x136   : > { %v229_v40 = vsel %vm228_vm3, %v222_v39, 0.0 }
 0x137   : > { %v231_v41 = vsel %vm230_vm4, %v229_v40, 0.0 }
 0x138   : > { %232 = vadd.xlane.f32.xlu2 %v231_v41 }
 0x1ab   : > { %v233_v42 = vpop.xlane.xlu2 %232 }
 0x1ac   : > { %v234_v43 = vrot.slane %v233_v42, 4 }
 0x1ae   : > { %v235_v44 = vadd.f32 %v234_v43, %v233_v42 }
 0x1b0   : > { %v236_v45 = vrot.slane %v235_v44, 2 }
 0x1b2   : > { %v237_v46 = vadd.f32 %v236_v45, %v235_v44 }
 0x1b4   : > { %v238_v47 = vrot.slane %v237_v46, 1 }
 0x1b6   : > { %v239_v48 = vadd.f32 %v238_v47, %v237_v46 }
 0x1b8   : > { %347 = vpush %v239_v48 }
 0x1e9   : > { %s348_s16 = spop %347 }
 0x1ea   : > { %v241_v49 = vstv %s348_s16 }
 0x1eb   : > { %242 = vst [vmem:[%s173_s7] sm:$0x1] %v241_v49 }
 0x1ec   : > { %460 = shalt.err (!%p457_p5)
}
 0x1ed   : > { %351 = dma.vmem_to_hbm [thread:$0]  (%p566_p10), %s255_s8, 16, %s257_s14, %s244_s17  }
 0x1ee PF: > { %p362_p7 = scmp.ge.s32.totalorder %s499_s12, 2  ;;  %s268_s23 = sand.u32 1, %s487_s9  }
 0x1ef   : > { %s269_s29 = scalar_lea.sflag [#allocation4], %s268_s23 }
 0x1f0   : > { %p358_p8 = pnand %p362_p7, %p570_p11 }
 0x1f2   : > { %p359_p9 = pneg %p358_p8 }
 0x1f4   : > { %482 = dma.done.wait (%p359_p9), %s269_s29, 16  }
 0x1f5   : > { %484 = vsyncadd (%p359_p9), %s269_s29, 4294967280  ;;  %p15_p1 = scmp.ge.s32.totalorder %s542_s15, 5   ;;  %s661_s9 = smov %s491_s10 }
 0x1f6   : > { %s662_s10 = smov %s495_s11  ;;  %s663_s11 = smov %s554_s18 }
 0x1f7   : > { %s664_s12 = smov %s542_s15  ;;  %17 = sbr.rel (!%p15_p1) target bundleno = 5 (0x5), region = 76 }
 0x1fc   :  { %274 = vsyncpa [#allocation3], 1 }
 0x1fd   :  { %276 = vsyncpa [#allocation3 + $0x1], 1 }
 0x1fe   :  { %277 = vsyncpa [#allocation4], 1 }
 0x1ff   :  { %279 = vsyncpa [#allocation4 + $0x1], 1 }

</bundles_post_ra>
